<compile_context>
chip_gen: v7x
topology: tpu7x:2x2x1
jax: 0.10.0
libtpu: 0.0.40
codegen_flags: <defaults>
</compile_context>

<pallas_src>
import numpy as np
import jax
import jax.numpy as jnp
from jax.experimental import pallas as pl
from jax.experimental.pallas import tpu as pltpu


# --------------------------------------------------------------------------------------
# Kernels
# --------------------------------------------------------------------------------------
def gcn_layer1_kernel(a_ref, h_ref, w1_ref, b1_ref, s1_ref, t1_ref, w2_ref,
                      h1p_ref, acc_ref):
    """Layer 1 (aggregate -> project) fused with the layer-2 projection.

    Grid = (dst_tile i [parallel], src_tile k [arbitrary]).
    acc_ref accumulates  A[i, k] @ H[k]  over k; on the last k we apply
    W1, bias, relu, folded BatchNorm, relu, and emit  H1 @ W2  (bf16) for layer 2.
    """
    k = pl.program_id(1)

    @pl.when(k == 0)
    def _():
        acc_ref[...] = jnp.zeros_like(acc_ref)

    # Message passing: bf16 inputs, f32 MXU accumulation.
    acc_ref[...] += jnp.dot(a_ref[...], h_ref[...], preferred_element_type=jnp.float32)

    @pl.when(k == pl.num_programs(1) - 1)
    def _():
        z1 = jnp.dot(acc_ref[...], w1_ref[...],
                     preferred_element_type=jnp.float32) + b1_ref[...]
        z1 = jnp.maximum(z1, 0.0)                                  # GraphConv activation
        h1 = jnp.maximum(z1 * s1_ref[...] + t1_ref[...], 0.0)      # BN(eval, folded) + outer relu
        # dropout(p=0.25) is identity in eval mode.
        # Project-then-aggregate for layer 2 (out_feats < in_feats): emit H1 @ W2.
        h1p_ref[...] = jnp.dot(h1, w2_ref[...],
                               preferred_element_type=jnp.float32).astype(h1p_ref.dtype)


def gcn_layer2_kernel(n_ref, a_ref, h1p_ref, b2_ref, s2_ref, t2_ref,
                      hnode_ref, hgp_ref, acc_ref):
    """Layer 2 aggregation of the already-projected features + readout partials.

    n_ref (SMEM, scalar-prefetch) holds the true node count so padded nodes are
    masked out of the per-node output and the readout partial sums.
    """
    i = pl.program_id(0)
    k = pl.program_id(1)

    @pl.when(k == 0)
    def _():
        acc_ref[...] = jnp.zeros_like(acc_ref)

    acc_ref[...] += jnp.dot(a_ref[...], h1p_ref[...], preferred_element_type=jnp.float32)

    @pl.when(k == pl.num_programs(1) - 1)
    def _():
        z2 = jnp.maximum(acc_ref[...] + b2_ref[...], 0.0)          # GraphConv activation
        h2 = jnp.maximum(z2 * s2_ref[...] + t2_ref[...], 0.0)      # BN(eval, folded) + outer relu
        tm = hnode_ref.shape[0]
        rows = i * tm + jax.lax.broadcasted_iota(jnp.int32, h2.shape, 0)
        h2 = jnp.where(rows < n_ref[0], h2, 0.0)                   # zero out padded nodes
        hnode_ref[...] = h2
        # Per-dst-tile partial column sum for mean_nodes (finalized in the wrapper).
        hgp_ref[...] = jnp.sum(h2, axis=0, keepdims=True)


# --------------------------------------------------------------------------------------
# Wrapper
# --------------------------------------------------------------------------------------
def _round_up(x, m):
    return ((x + m - 1) // m) * m


def _pad2(x, rows, cols):
    x = jnp.asarray(x)
    return jnp.zeros((rows, cols), x.dtype).at[: x.shape[0], : x.shape[1]].set(x)


def gnn_forward(a_norm, h, params, *, tm=128, tk=128, agg_dtype=jnp.bfloat16):
    """Returns (hg [1, out_dim], h_nodes [N, out_dim]) matching the eval-mode module."""
    n, in_dim = h.shape
    hid_dim = params["w1"].shape[1]
    out_dim = params["w2"].shape[1]

    # Lane-dense / tile-aligned padding.
    n_pad = _round_up(n, max(tm, tk))
    in_p = _round_up(in_dim, 128)
    hid_p = _round_up(hid_dim, 128)
    out_p = _round_up(out_dim, 128)
    ni, nk = n_pad // tm, n_pad // tk

    # bf16 for the O(N^2) aggregation operands; params stay f32.
    a_p = _pad2(a_norm, n_pad, n_pad).astype(agg_dtype)
    h_p = _pad2(h, n_pad, in_p).astype(agg_dtype)
    w1_p = _pad2(params["w1"], in_p, hid_p)
    w2_p = _pad2(params["w2"], hid_p, out_p)
    b1_p = _pad2(params["b1"][None, :], 1, hid_p)
    s1_p = _pad2(params["s1"][None, :], 1, hid_p)
    t1_p = _pad2(params["t1"][None, :], 1, hid_p)
    b2_p = _pad2(params["b2"][None, :], 1, out_p)
    s2_p = _pad2(params["s2"][None, :], 1, out_p)
    t2_p = _pad2(params["t2"][None, :], 1, out_p)

    cparams = pltpu.CompilerParams(
        dimension_semantics=("parallel", "arbitrary"),
        vmem_limit_bytes=32 * 1024 * 1024,
    )

    # ---- layer 1 (+ fused layer-2 projection) ----
    h1p = pl.pallas_call(
        gcn_layer1_kernel,
        out_shape=jax.ShapeDtypeStruct((n_pad, out_p), agg_dtype),
        grid_spec=pltpu.PrefetchScalarGridSpec(
            num_scalar_prefetch=0,
            grid=(ni, nk),
            in_specs=[
                pl.BlockSpec((tm, tk), lambda i, k: (i, k)),         # A tile
                pl.BlockSpec((tk, in_p), lambda i, k: (k, 0)),       # H src tile
                pl.BlockSpec((in_p, hid_p), lambda i, k: (0, 0)),    # W1
                pl.BlockSpec((1, hid_p), lambda i, k: (0, 0)),       # b1
                pl.BlockSpec((1, hid_p), lambda i, k: (0, 0)),       # BN1 scale
                pl.BlockSpec((1, hid_p), lambda i, k: (0, 0)),       # BN1 shift
                pl.BlockSpec((hid_p, out_p), lambda i, k: (0, 0)),   # W2 (layer-2 projection)
            ],
            out_specs=pl.BlockSpec((tm, out_p), lambda i, k: (i, 0)),
            scratch_shapes=[pltpu.VMEM((tm, in_p), jnp.float32)],
        ),
        compiler_params=cparams,
    )(a_p, h_p, w1_p, b1_p, s1_p, t1_p, w2_p)

    # ---- layer 2 aggregation + readout partials ----
    n_arr = jnp.array([n], dtype=jnp.int32)
    hnode_pad, hg_part = pl.pallas_call(
        gcn_layer2_kernel,
        out_shape=(
            jax.ShapeDtypeStruct((n_pad, out_p), jnp.float32),       # per-node features
            jax.ShapeDtypeStruct((ni, out_p), jnp.float32),          # per-tile readout sums
        ),
        grid_spec=pltpu.PrefetchScalarGridSpec(
            num_scalar_prefetch=1,                                   # true node count in SMEM
            grid=(ni, nk),
            in_specs=[
                pl.BlockSpec((tm, tk), lambda i, k, n_s: (i, k)),    # A tile
                pl.BlockSpec((tk, out_p), lambda i, k, n_s: (k, 0)), # H1 @ W2 src tile
                pl.BlockSpec((1, out_p), lambda i, k, n_s: (0, 0)),  # b2
                pl.BlockSpec((1, out_p), lambda i, k, n_s: (0, 0)),  # BN2 scale
                pl.BlockSpec((1, out_p), lambda i, k, n_s: (0, 0)),  # BN2 shift
            ],
            out_specs=[
                pl.BlockSpec((tm, out_p), lambda i, k, n_s: (i, 0)),
                pl.BlockSpec((1, out_p), lambda i, k, n_s: (i, 0)),
            ],
            scratch_shapes=[pltpu.VMEM((tm, out_p), jnp.float32)],
        ),
        compiler_params=cparams,
    )(n_arr, a_p, h1p, b2_p, s2_p, t2_p)

    # Finalize readout: sum of masked per-tile partials / true node count, drop padded lanes.
    hg = jnp.sum(hg_part, axis=0, keepdims=True) / jnp.float32(n)
    return hg[:, :out_dim], hnode_pad[:n, :out_dim]


# --------------------------------------------------------------------------------------
# Graph / parameter construction (JAX glue, outside the kernels)
# --------------------------------------------------------------------------------------
def build_normalized_adjacency(n, src, dst, edge_weight):
    """Dense D_in^{-1/2} A_w D_out^{-1/2} as used by DGL GraphConv(norm='both', edge_weight)."""
    a_w = jnp.zeros((n, n), jnp.float32).at[dst, src].add(edge_weight)   # [dst, src]
    ones = jnp.ones_like(edge_weight)
    out_deg = jnp.zeros((n,), jnp.float32).at[src].add(ones)
    in_deg = jnp.zeros((n,), jnp.float32).at[dst].add(ones)
    out_deg = jnp.clip(out_deg, 1.0)                                     # DGL clamps zero degree
    in_deg = jnp.clip(in_deg, 1.0)
    return (in_deg ** -0.5)[:, None] * a_w * (out_deg ** -0.5)[None, :]


def fold_batchnorm(gamma, beta, running_mean, running_var, eps=1e-5):
    scale = gamma / jnp.sqrt(running_var + eps)
    shift = beta - running_mean * scale
    return scale, shift


# --------------------------------------------------------------------------------------
# Demo / correctness check
# --------------------------------------------------------------------------------------
if __name__ == "__main__":
    key = jax.random.PRNGKey(0)
    N = 16          # nodes in the (single) graph
    E = 48          # edges
    IN_DIM = 8
    HIDDEN = 32
    OUT_DIM = 16

    keys = jax.random.split(key, 12)

    # deterministic synthetic graph
    src = jax.random.randint(keys[0], (E,), 0, N)
    dst = jax.random.randint(keys[1], (E,), 0, N)
    edge_weight = jax.random.uniform(keys[2], (E,), jnp.float32, 0.1, 1.0)
    a_norm = build_normalized_adjacency(N, src, dst, edge_weight)

    # node features
    h = jax.random.normal(keys[3], (N, IN_DIM), jnp.float32)

    # GraphConv weights/biases + BatchNorm1d (eval) stats
    w1 = jax.random.normal(keys[4], (IN_DIM, HIDDEN), jnp.float32) * (1.0 / np.sqrt(IN_DIM))
    b1 = jax.random.normal(keys[5], (HIDDEN,), jnp.float32) * 0.1
    w2 = jax.random.normal(keys[6], (HIDDEN, OUT_DIM), jnp.float32) * (1.0 / np.sqrt(HIDDEN))
    b2 = jax.random.normal(keys[7], (OUT_DIM,), jnp.float32) * 0.1

    g1 = 1.0 + 0.1 * jax.random.normal(keys[8], (HIDDEN,), jnp.float32)
    be1 = 0.1 * jax.random.normal(keys[9], (HIDDEN,), jnp.float32)
    g2 = 1.0 + 0.1 * jax.random.normal(keys[10], (OUT_DIM,), jnp.float32)
    be2 = 0.1 * jax.random.normal(keys[11], (OUT_DIM,), jnp.float32)
    rm1 = jnp.zeros((HIDDEN,), jnp.float32); rv1 = jnp.ones((HIDDEN,), jnp.float32)
    rm2 = jnp.zeros((OUT_DIM,), jnp.float32); rv2 = jnp.ones((OUT_DIM,), jnp.float32)

    s1, t1 = fold_batchnorm(g1, be1, rm1, rv1)
    s2, t2 = fold_batchnorm(g2, be2, rm2, rv2)

    params = dict(w1=w1, b1=b1, s1=s1, t1=t1, w2=w2, b2=b2, s2=s2, t2=t2)

    hg, hnode = gnn_forward(a_norm, h, params)
    jax.block_until_ready((hg, hnode))

    # pure-JAX f32 reference (the kernel aggregates in bf16 -> loosened tolerance)
    def ref(a, x):
        z1 = jnp.maximum(a @ x @ w1 + b1[None, :], 0.0)
        h1 = jnp.maximum(z1 * s1[None, :] + t1[None, :], 0.0)
        z2 = jnp.maximum(a @ h1 @ w2 + b2[None, :], 0.0)
        h2 = jnp.maximum(z2 * s2[None, :] + t2[None, :], 0.0)
        return jnp.mean(h2, axis=0, keepdims=True), h2

    hg_ref, hnode_ref = ref(a_norm, h)
    np.testing.assert_allclose(np.asarray(hnode), np.asarray(hnode_ref), rtol=3e-2, atol=3e-2)
    np.testing.assert_allclose(np.asarray(hg), np.asarray(hg_ref), rtol=3e-2, atol=3e-2)
    assert hg.shape == (1, OUT_DIM)
    assert hnode.shape == (N, OUT_DIM)

    print("KERNEL_OK")
</pallas_src>

<mosaic_0001>
module attributes {stable_mosaic.version = 11 : i64} {
  func.func @gcn_layer1_kernel(%arg0: i32, %arg1: i32, %arg2: memref<128x128xbf16, #tpu.memory_space<vmem>>, %arg3: memref<128x128xbf16, #tpu.memory_space<vmem>>, %arg4: memref<128x128xf32, #tpu.memory_space<vmem>>, %arg5: memref<1x128xf32, #tpu.memory_space<vmem>>, %arg6: memref<1x128xf32, #tpu.memory_space<vmem>>, %arg7: memref<1x128xf32, #tpu.memory_space<vmem>>, %arg8: memref<128x128xf32, #tpu.memory_space<vmem>>, %arg9: memref<128x128xbf16, #tpu.memory_space<vmem>>, %arg10: memref<128x128xf32, #tpu.memory_space<vmem>>) attributes {dimension_semantics = [#tpu.dimension_semantics<parallel>, #tpu.dimension_semantics<arbitrary>], iteration_bounds = array<i64: 1, 1>, scalar_prefetch = 0 : i64, scratch_operands = 1 : i64, tpu.core_type = #tpu.core_type<tc>, window_params = [{transform_indices = @transform_0, window_bounds = array<i64: 128, 128>}, {transform_indices = @transform_1, window_bounds = array<i64: 128, 128>}, {pipeline_mode = #tpu.pipeline_mode<synchronous>, transform_indices = @transform_2, window_bounds = array<i64: 128, 128>}, {pipeline_mode = #tpu.pipeline_mode<synchronous>, transform_indices = @transform_3, window_bounds = array<i64: 1, 128>}, {pipeline_mode = #tpu.pipeline_mode<synchronous>, transform_indices = @transform_4, window_bounds = array<i64: 1, 128>}, {pipeline_mode = #tpu.pipeline_mode<synchronous>, transform_indices = @transform_5, window_bounds = array<i64: 1, 128>}, {pipeline_mode = #tpu.pipeline_mode<synchronous>, transform_indices = @transform_6, window_bounds = array<i64: 128, 128>}, {transform_indices = @transform_7, window_bounds = array<i64: 128, 128>}]} {
    %c0_i32 = arith.constant 0 : i32
    %0 = arith.cmpi eq, %arg1, %c0_i32 : i32
    %1 = arith.extui %0 : i1 to i32
    %c0_i32_0 = arith.constant 0 : i32
    %2 = arith.cmpi ne, %1, %c0_i32_0 : i32
    scf.if %2 {
      %cst_10 = arith.constant 0.000000e+00 : f32
      %12 = vector.broadcast %cst_10 : f32 to vector<128x128xf32>
      %c0_11 = arith.constant 0 : index
      %c0_12 = arith.constant 0 : index
      %13 = vector.load %arg10[%c0_11, %c0_12] : memref<128x128xf32, #tpu.memory_space<vmem>>, vector<128x128xf32>
      tpu.vector_store %arg10[%c0_11, %c0_12], %12 {strides = array<i32>} : memref<128x128xf32, #tpu.memory_space<vmem>>, vector<128x128xf32>,
    } else {
    }
    %c0 = arith.constant 0 : index
    %c0_1 = arith.constant 0 : index
    %3 = vector.load %arg10[%c0, %c0_1] : memref<128x128xf32, #tpu.memory_space<vmem>>, vector<128x128xf32>
    %c0_2 = arith.constant 0 : index
    %c0_3 = arith.constant 0 : index
    %4 = vector.load %arg2[%c0_2, %c0_3] : memref<128x128xbf16, #tpu.memory_space<vmem>>, vector<128x128xbf16>
    %c0_4 = arith.constant 0 : index
    %c0_5 = arith.constant 0 : index
    %5 = vector.load %arg3[%c0_4, %c0_5] : memref<128x128xbf16, #tpu.memory_space<vmem>>, vector<128x128xbf16>
    %cst = arith.constant dense<0.000000e+00> : vector<128x128xf32>
    %6 = tpu.matmul %4, %5, %cst {dimension_numbers = #tpu.dot_dimension_numbers<[1], [0], [0], [1], [0, 0, 1, 1], [], []>} : vector<128x128xbf16>, vector<128x128xbf16>, vector<128x128xf32> -> vector<128x128xf32>
    %7 = arith.addf %3, %6 : vector<128x128xf32>
    %c0_6 = arith.constant 0 : index
    %c0_7 = arith.constant 0 : index
    %8 = vector.load %arg10[%c0_6, %c0_7] : memref<128x128xf32, #tpu.memory_space<vmem>>, vector<128x128xf32>
    tpu.vector_store %arg10[%c0_6, %c0_7], %7 {strides = array<i32>} : memref<128x128xf32, #tpu.memory_space<vmem>>, vector<128x128xf32>,
    %c0_i32_8 = arith.constant 0 : i32
    %9 = arith.cmpi eq, %arg1, %c0_i32_8 : i32
    %10 = arith.extui %9 : i1 to i32
    %c0_i32_9 = arith.constant 0 : i32
    %11 = arith.cmpi ne, %10, %c0_i32_9 : i32
    scf.if %11 {
      %c0_10 = arith.constant 0 : index
      %c0_11 = arith.constant 0 : index
      %12 = vector.load %arg10[%c0_10, %c0_11] : memref<128x128xf32, #tpu.memory_space<vmem>>, vector<128x128xf32>
      %c0_12 = arith.constant 0 : index
      %c0_13 = arith.constant 0 : index
      %13 = vector.load %arg4[%c0_12, %c0_13] : memref<128x128xf32, #tpu.memory_space<vmem>>, vector<128x128xf32>
      %cst_14 = arith.constant dense<0.000000e+00> : vector<128x128xf32>
      %14 = tpu.matmul %12, %13, %cst_14 {dimension_numbers = #tpu.dot_dimension_numbers<[1], [0], [0], [1], [0, 0, 1, 1], [], []>} : vector<128x128xf32>, vector<128x128xf32>, vector<128x128xf32> -> vector<128x128xf32>
      %c0_15 = arith.constant 0 : index
      %c0_16 = arith.constant 0 : index
      %15 = vector.load %arg5[%c0_15, %c0_16] : memref<1x128xf32, #tpu.memory_space<vmem>>, vector<1x128xf32>
      %16 = vector.broadcast %15 : vector<1x128xf32> to vector<128x128xf32>
      %17 = arith.addf %14, %16 : vector<128x128xf32>
      %cst_17 = arith.constant 0.000000e+00 : f32
      %18 = vector.broadcast %cst_17 : f32 to vector<128x128xf32>
      %19 = arith.maximumf %17, %18 : vector<128x128xf32>
      %c0_18 = arith.constant 0 : index
      %c0_19 = arith.constant 0 : index
      %20 = vector.load %arg6[%c0_18, %c0_19] : memref<1x128xf32, #tpu.memory_space<vmem>>, vector<1x128xf32>
      %21 = vector.broadcast %20 : vector<1x128xf32> to vector<128x128xf32>
      %22 = arith.mulf %19, %21 : vector<128x128xf32>
      %c0_20 = arith.constant 0 : index
      %c0_21 = arith.constant 0 : index
      %23 = vector.load %arg7[%c0_20, %c0_21] : memref<1x128xf32, #tpu.memory_space<vmem>>, vector<1x128xf32>
      %24 = vector.broadcast %23 : vector<1x128xf32> to vector<128x128xf32>
      %25 = arith.addf %22, %24 : vector<128x128xf32>
      %cst_22 = arith.constant 0.000000e+00 : f32
      %26 = vector.broadcast %cst_22 : f32 to vector<128x128xf32>
      %27 = arith.maximumf %25, %26 : vector<128x128xf32>
      %c0_23 = arith.constant 0 : index
      %c0_24 = arith.constant 0 : index
      %28 = vector.load %arg8[%c0_23, %c0_24] : memref<128x128xf32, #tpu.memory_space<vmem>>, vector<128x128xf32>
      %cst_25 = arith.constant dense<0.000000e+00> : vector<128x128xf32>
      %29 = tpu.matmul %27, %28, %cst_25 {dimension_numbers = #tpu.dot_dimension_numbers<[1], [0], [0], [1], [0, 0, 1, 1], [], []>} : vector<128x128xf32>, vector<128x128xf32>, vector<128x128xf32> -> vector<128x128xf32>
      %30 = arith.truncf %29 : vector<128x128xf32> to vector<128x128xbf16>
      %c0_26 = arith.constant 0 : index
      %c0_27 = arith.constant 0 : index
      %31 = vector.load %arg9[%c0_26, %c0_27] : memref<128x128xbf16, #tpu.memory_space<vmem>>, vector<128x128xbf16>
      tpu.vector_store %arg9[%c0_26, %c0_27], %30 {strides = array<i32>} : memref<128x128xbf16, #tpu.memory_space<vmem>>, vector<128x128xbf16>,
    } else {
    }
    return
  }
  func.func @transform_0(%arg0: i32, %arg1: i32) -> (i32, i32) {
    %c0_i32 = arith.constant 0 : i32
    return %arg0, %arg1 : i32, i32
  }
  func.func @transform_1(%arg0: i32, %arg1: i32) -> (i32, i32) {
    %c0_i32 = arith.constant 0 : i32
    %c0_i32_0 = arith.constant 0 : i32
    return %arg1, %c0_i32 : i32, i32
  }
  func.func @transform_2(%arg0: i32, %arg1: i32) -> (i32, i32) {
    %c0_i32 = arith.constant 0 : i32
    %c0_i32_0 = arith.constant 0 : i32
    %c0_i32_1 = arith.constant 0 : i32
    return %c0_i32, %c0_i32_0 : i32, i32
  }
  func.func @transform_3(%arg0: i32, %arg1: i32) -> (i32, i32) {
    %c0_i32 = arith.constant 0 : i32
    %c0_i32_0 = arith.constant 0 : i32
    %c0_i32_1 = arith.constant 0 : i32
    return %c0_i32, %c0_i32_0 : i32, i32
  }
  func.func @transform_4(%arg0: i32, %arg1: i32) -> (i32, i32) {
    %c0_i32 = arith.constant 0 : i32
    %c0_i32_0 = arith.constant 0 : i32
    %c0_i32_1 = arith.constant 0 : i32
    return %c0_i32, %c0_i32_0 : i32, i32
  }
  func.func @transform_5(%arg0: i32, %arg1: i32) -> (i32, i32) {
    %c0_i32 = arith.constant 0 : i32
    %c0_i32_0 = arith.constant 0 : i32
    %c0_i32_1 = arith.constant 0 : i32
    return %c0_i32, %c0_i32_0 : i32, i32
  }
  func.func @transform_6(%arg0: i32, %arg1: i32) -> (i32, i32) {
    %c0_i32 = arith.constant 0 : i32
    %c0_i32_0 = arith.constant 0 : i32
    %c0_i32_1 = arith.constant 0 : i32
    return %c0_i32, %c0_i32_0 : i32, i32
  }
  func.func @transform_7(%arg0: i32, %arg1: i32) -> (i32, i32) {
    %c0_i32 = arith.constant 0 : i32
    %c0_i32_0 = arith.constant 0 : i32
    return %arg0, %c0_i32 : i32, i32
  }
}

</mosaic_0001>

<bundles_post_ra>
// kernel: tpu_custom_call.1
= control target key start
LH: loop header
LB: loop body
LE: loop exit
PB: predicated region body
PF: predicated region fallthrough
CT: control target
= control target key end

     0   :  { %12 = vsyncpa [#allocation4], 0  ;;  %s1634_s0 = inlined_call_operand.hbm [shape: bf16[128,128], index: 0, kind: input, shape index: {}]   ;;  %s1635_s1 = inlined_call_operand.hbm [shape: bf16[128,128], index: 1, kind: input, shape index: {}]   ;;  %s1636_s2 = inlined_call_operand.hbm [shape: f32[128,128], index: 2, kind: input, shape index: {}]   ;;  %s1637_s3 = inlined_call_operand.vmem [shape: f32[1,128], index: 3, kind: input, shape index: {}]   ;;  %s1638_s4 = inlined_call_operand.vmem [shape: f32[1,128], index: 4, kind: input, shape index: {}]   ;;  %s1639_s5 = inlined_call_operand.vmem [shape: f32[1,128], index: 5, kind: input, shape index: {}]   ;;  %s1640_s6 = inlined_call_operand.hbm [shape: f32[128,128], index: 6, kind: input, shape index: {}]   ;;  %s1641_s7 = inlined_call_operand.hbm [shape: bf16[128,128], index: 7, kind: output, shape index: {}]  }
   0x1   :  { %13 = vsyncpa [#allocation7], 0 }
   0x2   :  { %14 = vsyncpa [#allocation10], 0 }
   0x3   :  { %15 = vsyncpa [#allocation5], 0  ;;  %s1446_s24 = smov [#allocation6]   ;;  %s1447_s26 = smov [#allocation3]  }
   0x4   :  { %s33_s25 = sshll.u32 %s1446_s24, 4  ;;  %s21_s27 = sshll.u32 %s1447_s26, 4  ;;  %s34_s25 = int_to_ptr.vmem [resolvable:$true] %s33_s25  ;;  %s1495_s27 = int_to_ptr.vmem [resolvable:$true] %s21_s27 }
   0x5   :  { %s1328_s30 = scalar_lea.hbm %s1635_s1, 1024 }
   0x6   :  { %p1329_p0 = scmp.ne.s32.totalorder %s1635_s1, %s1328_s30  ;;  %p1332_p1 = scmp.lt.u32.totalorder %s1328_s30, %s1635_s1 }
   0x8   :  { %p1334_p2 = pnand %p1332_p1, %p1329_p0 }
   0xa   :  { %1337 = shalt.err (!%p1334_p2)
}
   0xb   :  { %s1338_s12 = scalar_lea.vmem %s34_s25, 1024  ;;  %p1343_p4 = scmp.lt.s32.totalorder %s34_s25, %s34_s25 }
   0xc   :  { %p1339_p3 = scmp.ne.s32.totalorder %s34_s25, %s1338_s12  ;;  %p1344_p5 = scmp.lt.s32.totalorder %s1338_s12, %s1338_s12 }
   0xe   :  { %p1345_p6 = por %p1344_p5, %p1343_p4 }
  0x10   :  { %p1346_p7 = pnand %p1345_p6, %p1339_p3 }
  0x12   :  { %1349 = shalt.err (!%p1346_p7)
}
  0x13   :  { %s1448_s13 = smov 64   ;;  %s1449_s14 = smov 4  }
  0x14   :  { %39 = dma.hbm_to_vmem [thread:$0]  %s1635_s1, 1024, %s34_s25, [#allocation7], %s1448_s13, %s1448_s13, %s1449_s14  }
  0x15   :  { %s1350_s19 = scalar_lea.hbm %s1634_s0, 1024 }
  0x16   :  { %p1351_p8 = scmp.ne.s32.totalorder %s1634_s0, %s1350_s19  ;;  %p1354_p9 = scmp.lt.u32.totalorder %s1350_s19, %s1634_s0 }
  0x18   :  { %p1356_p10 = pnand %p1354_p9, %p1351_p8 }
  0x1a   :  { %1359 = shalt.err (!%p1356_p10)
}
  0x1b   :  { %s1360_s24 = scalar_lea.vmem %s1495_s27, 1024  ;;  %p1365_p12 = scmp.lt.s32.totalorder %s1495_s27, %s1495_s27 }
  0x1c   :  { %p1361_p11 = scmp.ne.s32.totalorder %s1495_s27, %s1360_s24  ;;  %p1366_p13 = scmp.lt.s32.totalorder %s1360_s24, %s1360_s24 }
  0x1e   :  { %p1367_p0 = por %p1366_p13, %p1365_p12 }
  0x20   :  { %p1368_p1 = pnand %p1367_p0, %p1361_p11 }
  0x22   :  { %1371 = shalt.err (!%p1368_p1)
}
  0x23   :  { %27 = dma.hbm_to_vmem [thread:$0]  %s1634_s0, 1024, %s1495_s27, [#allocation4], %s1448_s13, %s1448_s13, %s1449_s14  }
  0x24   :  { %s1450_s26 = smov [#allocation8]   ;;  %s1372_s8 = scalar_lea.hbm %s1636_s2, 2048 }
  0x25   :  { %s45_s28 = sshll.u32 %s1450_s26, 4  ;;  %p1373_p2 = scmp.ne.s32.totalorder %s1636_s2, %s1372_s8  ;;  %s46_s28 = int_to_ptr.vmem [resolvable:$true] %s45_s28 }
  0x26   :  { %p1376_p3 = scmp.lt.u32.totalorder %s1372_s8, %s1636_s2 }
  0x28   :  { %p1378_p4 = pnand %p1376_p3, %p1373_p2 }
  0x2a   :  { %1381 = shalt.err (!%p1378_p4)
}
  0x2b   :  { %s1382_s15 = scalar_lea.vmem %s46_s28, 2048  ;;  %p1387_p6 = scmp.lt.s32.totalorder %s46_s28, %s46_s28 }
  0x2c   :  { %p1383_p5 = scmp.ne.s32.totalorder %s46_s28, %s1382_s15  ;;  %p1388_p7 = scmp.lt.s32.totalorder %s1382_s15, %s1382_s15 }
  0x2e   :  { %p1389_p8 = por %p1388_p7, %p1387_p6 }
  0x30   :  { %p1390_p9 = pnand %p1389_p8, %p1383_p5 }
  0x32   :  { %1393 = shalt.err (!%p1390_p9)
}
  0x33   :  { %s1451_s0 = smov 128   ;;  %s1452_s27 = smov 8  }
  0x34   :  { %51 = dma.hbm_to_vmem [thread:$0]  %s1636_s2, 2048, %s46_s28, [#allocation7], %s1451_s0, %s1451_s0, %s1452_s27  }
  0x35   :  { %s1453_s18 = smov [#allocation9]   ;;  %s1394_s22 = scalar_lea.hbm %s1640_s6, 2048 }
  0x36   :  { %s63_s19 = sshll.u32 %s1453_s18, 4  ;;  %p1395_p10 = scmp.ne.s32.totalorder %s1640_s6, %s1394_s22  ;;  %s64_s19 = int_to_ptr.vmem [resolvable:$true] %s63_s19 }
  0x37   :  { %p1398_p11 = scmp.lt.u32.totalorder %s1394_s22, %s1640_s6 }
  0x39   :  { %p1400_p12 = pnand %p1398_p11, %p1395_p10 }
  0x3b   :  { %1403 = shalt.err (!%p1400_p12)
}
  0x3c   :  { %s1404_s26 = scalar_lea.vmem %s64_s19, 2048  ;;  %p1409_p0 = scmp.lt.s32.totalorder %s64_s19, %s64_s19 }
  0x3d   :  { %p1405_p13 = scmp.ne.s32.totalorder %s64_s19, %s1404_s26  ;;  %p1410_p1 = scmp.lt.s32.totalorder %s1404_s26, %s1404_s26 }
  0x3f   :  { %p1411_p2 = por %p1410_p1, %p1409_p0 }
  0x41   :  { %p1412_p3 = pnand %p1411_p2, %p1405_p13 }
  0x43   :  { %1415 = shalt.err (!%p1412_p3)
}
  0x44   :  { %69 = dma.hbm_to_vmem [thread:$0]  %s1640_s6, 2048, %s64_s19, [#allocation10], %s1451_s0, %s1451_s0, %s1452_s27  }
  0x45   :  { %1438 = dma.done.wait [#allocation4], 1024  }
  0x46   :  { %1439 = vsyncadd [#allocation4], 4294966272 }
  0x47   :  { %1440 = dma.done.wait [#allocation7], 3072  }
  0x48   :  { %1441 = vsyncadd [#allocation7], 4294964224 }
  0x49   :  { %1442 = dma.done.wait [#allocation10], 2048  }
  0x4a   :  { %1443 = vsyncadd [#allocation10], 4294965248  ;;  %v1312_v0 = vld [vmem:[#allocation6] sm:$0xff]   ;;  %v1313_v1 = vld [vmem:[#allocation6 + $0x8] sm:$0xff]  }
  0x4b   :  { %1079 = vmatprep.subr.bf16.mxu0 %v1312_v0  ;;  %v1314_v2 = vld [vmem:[#allocation6 + $0x10] sm:$0xff]   ;;  %v1315_v3 = vld [vmem:[#allocation6 + $0x18] sm:$0xff]   ;;  %v1320_v4 = vld [vmem:[#allocation3] sm:$0xff]  }
  0x4c   :  { %1080 = vmatpush3.bf16.msra.mxu0 %v1312_v0  ;;  %1095 = vmatprep.mubr.bf16.mxu0 %v1320_v4  ;;  %v1316_v5 = vld [vmem:[#allocation6 + $0x20] sm:$0xff]   ;;  %v1317_v6 = vld [vmem:[#allocation6 + $0x28] sm:$0xff]   ;;  %v397_v9 = vld [vmem:[#allocation8 + $0x10] sm:$0xff] }
  0x4d   :  { %1081 = vmatprep.subr.bf16.mxu0 %v1313_v1  ;;  %v395_v7 = vld [vmem:[#allocation8] sm:$0xff]  ;;  %v396_v8 = vld [vmem:[#allocation8 + $0x8] sm:$0xff]  ;;  %v398_v11 = vld [vmem:[#allocation8 + $0x18] sm:$0xff] }
  0x4e   :  { %v1223_v10 = vpack.c.bf16 %v396_v8, %v395_v7  ;;  %v1227_v12 = vpack.c.bf16 %v398_v11, %v397_v9  ;;  %v399_v13 = vld [vmem:[#allocation8 + $0x20] sm:$0xff]  ;;  %v400_v14 = vld [vmem:[#allocation8 + $0x28] sm:$0xff]  ;;  %v1318_v15 = vld [vmem:[#allocation6 + $0x30] sm:$0xff]  }
  0x4f   :  { %v1231_v16 = vpack.c.bf16 %v400_v14, %v399_v13  ;;  %v401_v17 = vld [vmem:[#allocation8 + $0x30] sm:$0xff]  ;;  %v402_v18 = vld [vmem:[#allocation8 + $0x38] sm:$0xff]  ;;  %v403_v21 = vld [vmem:[#allocation8 + $0x40] sm:$0xff] }
  0x50   :  { %1082 = vmatpush3.bf16.msra.mxu0 %v1313_v1  ;;  %1224 = vmatprep.subr.bf16.mxu1 %v1223_v10  ;;  %v1319_v19 = vld [vmem:[#allocation6 + $0x38] sm:$0xff]   ;;  %v1235_v20 = vpack.c.bf16 %v402_v18, %v401_v17  ;;  %v404_v22 = vld [vmem:[#allocation8 + $0x48] sm:$0xff]  ;;  %v405_v25 = vld [vmem:[#allocation8 + $0x50] sm:$0xff] }
  0x51   :  { %1083 = vmatprep.subr.bf16.mxu0 %v1314_v2  ;;  %1226 = vmatpush3.bf16.msra.mxu1 %v1223_v10  ;;  %v1239_v23 = vpack.c.bf16 %v404_v22, %v403_v21  ;;  %v1321_v24 = vld [vmem:[#allocation3 + $0x8] sm:$0xff]   ;;  %v406_v26 = vld [vmem:[#allocation8 + $0x58] sm:$0xff]  ;;  %v1322_v27 = vld [vmem:[#allocation3 + $0x10] sm:$0xff]  }
  0x52   :  { %1228 = vmatprep.subr.bf16.mxu1 %v1227_v12  ;;  %v1243_v28 = vpack.c.bf16 %v406_v26, %v405_v25  ;;  %v407_v29 = vld [vmem:[#allocation8 + $0x60] sm:$0xff]  ;;  %v408_v30 = vld [vmem:[#allocation8 + $0x68] sm:$0xff]  ;;  %v1323_v32 = vld [vmem:[#allocation3 + $0x18] sm:$0xff]  }
  0x53   :  { %v1247_v31 = vpack.c.bf16 %v408_v30, %v407_v29  ;;  %v1324_v33 = vld [vmem:[#allocation3 + $0x20] sm:$0xff]   ;;  %v1325_v34 = vld [vmem:[#allocation3 + $0x28] sm:$0xff]   ;;  %v1326_v35 = vld [vmem:[#allocation3 + $0x30] sm:$0xff]  }
  0x54   :  { %1084 = vmatpush3.bf16.msra.mxu0 %v1314_v2  ;;  %v1327_v36 = vld [vmem:[#allocation3 + $0x38] sm:$0xff]   ;;  %v409_v37 = vld [vmem:[#allocation8 + $0x70] sm:$0xff]  ;;  %v641_v40 = vld [vmem:[#allocation9] sm:$0xff] }
  0x55   :  { %1085 = vmatprep.subr.bf16.mxu0 %v1315_v3  ;;  %1230 = vmatpush3.bf16.msra.mxu1 %v1227_v12  ;;  %v410_v38 = vld [vmem:[#allocation8 + $0x78] sm:$0xff]  ;;  %v642_v41 = vld [vmem:[#allocation9 + $0x8] sm:$0xff]  ;;  %v643_v42 = vld [vmem:[#allocation9 + $0x10] sm:$0xff] }
  0x56   :  { %1232 = vmatprep.subr.bf16.mxu1 %v1231_v16  ;;  %v1251_v39 = vpack.c.bf16 %v410_v38, %v409_v37  ;;  %v1255_v43 = vpack.c.bf16 %v642_v41, %v641_v40  ;;  %v644_v44 = vld [vmem:[#allocation9 + $0x18] sm:$0xff]  ;;  %v645_v46 = vld [vmem:[#allocation9 + $0x20] sm:$0xff]  ;;  %v646_v47 = vld [vmem:[#allocation9 + $0x28] sm:$0xff] }
  0x57   :  { %v1259_v45 = vpack.c.bf16 %v644_v44, %v643_v42  ;;  %v1263_v48 = vpack.c.bf16 %v646_v47, %v645_v46  ;;  %v647_v49 = vld [vmem:[#allocation9 + $0x30] sm:$0xff]  ;;  %v648_v50 = vld [vmem:[#allocation9 + $0x38] sm:$0xff]  ;;  %v649_v52 = vld [vmem:[#allocation9 + $0x40] sm:$0xff] }
  0x58   :  { %1086 = vmatpush3.bf16.msra.mxu0 %v1315_v3  ;;  %v1267_v51 = vpack.c.bf16 %v648_v50, %v647_v49  ;;  %v650_v53 = vld [vmem:[#allocation9 + $0x48] sm:$0xff]  ;;  %v651_v7 = vld [vmem:[#allocation9 + $0x50] sm:$0xff]  ;;  %v652_v8 = vld [vmem:[#allocation9 + $0x58] sm:$0xff] }
  0x59   :  { %1087 = vmatprep.subr.bf16.mxu0 %v1316_v5  ;;  %1234 = vmatpush3.bf16.msra.mxu1 %v1231_v16  ;;  %v1271_v54 = vpack.c.bf16 %v650_v53, %v649_v52  ;;  %v1275_v9 = vpack.c.bf16 %v652_v8, %v651_v7  ;;  %v653_v10 = vld [vmem:[#allocation9 + $0x60] sm:$0xff]  ;;  %v654_v11 = vld [vmem:[#allocation9 + $0x68] sm:$0xff]  ;;  %v655_v13 = vld [vmem:[#allocation9 + $0x70] sm:$0xff] }
  0x5a   :  { %1236 = vmatprep.subr.bf16.mxu1 %v1235_v20  ;;  %v1279_v12 = vpack.c.bf16 %v654_v11, %v653_v10  ;;  %v656_v14 = vld [vmem:[#allocation9 + $0x78] sm:$0xff]  ;;  %v1559_v16 = vld [vmem:[%s1637_s3] ss:$0 sm:$0xff]  ;;  %s1454_s3 = smov [#allocation11]  }
  0x5c   :  { %1088 = vmatpush3.bf16.msra.mxu0 %v1316_v5 }
  0x5d   :  { %1089 = vmatprep.subr.bf16.mxu0 %v1317_v6  ;;  %1238 = vmatpush3.bf16.msra.mxu1 %v1235_v20  ;;  %v1565_v20 = vld [vmem:[%s1638_s4] ss:$0 sm:$0xff]  ;;  %s887_s4 = sshll.u32 %s1454_s3, 4  ;;  %s888_s4 = int_to_ptr.vmem [resolvable:$true] %s887_s4 }
  0x5e   :  { %1240 = vmatprep.subr.bf16.mxu1 %v1239_v23  ;;  %p1421_p5 = scmp.lt.s32.totalorder %s888_s4, %s888_s4 }
  0x60   :  { %1090 = vmatpush3.bf16.msra.mxu0 %v1317_v6 }
  0x61   :  { %1091 = vmatprep.subr.bf16.mxu0 %v1318_v15  ;;  %1242 = vmatpush3.bf16.msra.mxu1 %v1239_v23  ;;  %v1571_v23 = vld [vmem:[%s1639_s5] ss:$0 sm:$0xff]  ;;  %s1416_s5 = scalar_lea.vmem %s888_s4, 1024 }
  0x62   :  { %1244 = vmatprep.subr.bf16.mxu1 %v1243_v28  ;;  %p1417_p4 = scmp.ne.s32.totalorder %s888_s4, %s1416_s5  ;;  %p1422_p6 = scmp.lt.s32.totalorder %s1416_s5, %s1416_s5 }
  0x64   :  { %1092 = vmatpush3.bf16.msra.mxu0 %v1318_v15  ;;  %v1283_v15 = vpack.c.bf16 %v656_v14, %v655_v13  ;;  %p1423_p7 = por %p1422_p6, %p1421_p5 }
  0x65   :  { %1093 = vmatprep.subr.bf16.mxu0 %v1319_v19  ;;  %1246 = vmatpush3.bf16.msra.mxu1 %v1243_v28 }
  0x66   :  { %1248 = vmatprep.subr.bf16.mxu1 %v1247_v31  ;;  %p1424_p8 = pnand %p1423_p7, %p1417_p4 }
  0x68   :  { %1094 = vmatpush3.bf16.msra.mxu0 %v1319_v19 }
  0x69   :  { %1250 = vmatpush3.bf16.msra.mxu1 %v1247_v31  ;;  %1256 = vmatprep.subr.bf16.mxu0 %v1255_v43 }
  0x6a   :  { %1252 = vmatprep.subr.bf16.mxu1 %v1251_v39 }
  0x6b   :  { %1096 = vmatmul.mubr.bf16.vlgmr.msra.gmra.mrb[0].mxu0 %v1321_v24 }
  0x6c   :  { %1099 = vmatprep.mubr.bf16.mxu0 %v1322_v27  ;;  %1258 = vmatpush3.bf16.msra.mxu0 %v1255_v43 }
  0x6d   :  { %1254 = vmatpush3.bf16.msra.mxu1 %v1251_v39  ;;  %1260 = vmatprep.subr.bf16.mxu0 %v1259_v45 }
  0x6e   :  { %1287 = vmatprep.subr.bf16.mxu1 %v1255_v43 }
  0x70   :  { %1262 = vmatpush3.bf16.msra.mxu0 %v1259_v45 }
  0x71   :  { %1264 = vmatprep.subr.bf16.mxu0 %v1263_v48 }
  0x73   :  { %1100 = vmatmul.mubr.bf16.gmra.mrb[4].mxu0 %v1323_v32 }
  0x74   :  { %1103 = vmatprep.mubr.bf16.mxu0 %v1324_v33  ;;  %1266 = vmatpush3.bf16.msra.mxu0 %v1263_v48 }
  0x75   :  { %1268 = vmatprep.subr.bf16.mxu0 %v1267_v51 }
  0x78   :  { %1270 = vmatpush3.bf16.msra.mxu0 %v1267_v51 }
  0x79   :  { %1272 = vmatprep.subr.bf16.mxu0 %v1271_v54 }
  0x7b   :  { %1104 = vmatmul.mubr.bf16.gmra.mrb[8].mxu0 %v1325_v34 }
  0x7c   :  { %1107 = vmatprep.mubr.bf16.mxu0 %v1326_v35  ;;  %1274 = vmatpush3.bf16.msra.mxu0 %v1271_v54 }
  0x7d   :  { %1276 = vmatprep.subr.bf16.mxu0 %v1275_v9 }
  0x80   :  { %1278 = vmatpush3.bf16.msra.mxu0 %v1275_v9 }
  0x81   :  { %1280 = vmatprep.subr.bf16.mxu0 %v1279_v12 }
  0x83   :  { %1108 = vmatmul.mubr.bf16.gmra.mrb[12].mxu0 %v1327_v36 }
  0x84   :  { %1282 = vmatpush3.bf16.msra.mxu0 %v1279_v12 }
  0x85   :  { %1284 = vmatprep.subr.bf16.mxu0 %v1283_v15 }
  0x88   :  { %1286 = vmatpush3.bf16.msra.mxu0 %v1283_v15 }
 0x13e   :  { %v1097_v55 = vpop.f32.mrb[0].mxu0 }
 0x13f   :  { %v281_v56 = vpop.f32.mrb[1].mxu0 }
 0x140   :  { %v1098_v57 = vpop.f32.mrb[2].mxu0  ;;  %1143 = vmatprep.mubr.f32.mxu1 %v281_v56 }
 0x141   :  { %v284_v58 = vpop.f32.mrb[3].mxu0 }
 0x142   :  { %1144 = vmatmul.mubr.f32.vlgmr.msra.gmra.mrb[0].mxu1 %v284_v58 }
 0x143   :  { %1146 = vmatprep.mubr.f32.mxu1 %v1097_v55  ;;  %1295 = vmatpush3.bf16.msra.mxu1 %v1255_v43 }
 0x144   :  { %1288 = vmatprep.subr.bf16.mxu1 %v1259_v45 }
 0x146   :  { %v1101_v59 = vpop.f32.mrb[4].mxu0  ;;  %1147 = vmatmul.mubr.f32.gmra.mrb[2].mxu1 %v1098_v57 }
 0x147   :  { %v297_v60 = vpop.f32.mrb[5].mxu0  ;;  %1296 = vmatpush3.bf16.msra.mxu1 %v1259_v45 }
 0x148   :  { %v1102_v61 = vpop.f32.mrb[6].mxu0  ;;  %1149 = vmatprep.mubr.f32.mxu1 %v297_v60  ;;  %1289 = vmatprep.subr.bf16.mxu1 %v1263_v48 }
 0x149   :  { %v300_v62 = vpop.f32.mrb[7].mxu0 }
 0x14a   :  { %1150 = vmatmul.mubr.f32.gmra.mrb[4].mxu1 %v300_v62 }
 0x14b   :  { %1152 = vmatprep.mubr.f32.mxu1 %v1101_v59  ;;  %1297 = vmatpush3.bf16.msra.mxu1 %v1263_v48 }
 0x14c   :  { %1290 = vmatprep.subr.bf16.mxu1 %v1267_v51 }
 0x14e   :  { %v1105_v63 = vpop.f32.mrb[8].mxu0  ;;  %1153 = vmatmul.mubr.f32.gmra.mrb[6].mxu1 %v1102_v61 }
 0x14f   :  { %v313_v0 = vpop.f32.mrb[9].mxu0  ;;  %1298 = vmatpush3.bf16.msra.mxu1 %v1267_v51 }
 0x150   :  { %v1106_v1 = vpop.f32.mrb[10].mxu0  ;;  %1155 = vmatprep.mubr.f32.mxu1 %v313_v0  ;;  %1291 = vmatprep.subr.bf16.mxu1 %v1271_v54 }
 0x151   :  { %v316_v2 = vpop.f32.mrb[11].mxu0 }
 0x152   :  { %1156 = vmatmul.mubr.f32.gmra.mrb[8].mxu1 %v316_v2 }
 0x153   :  { %1158 = vmatprep.mubr.f32.mxu1 %v1105_v63  ;;  %1299 = vmatpush3.bf16.msra.mxu1 %v1271_v54 }
 0x154   :  { %1292 = vmatprep.subr.bf16.mxu1 %v1275_v9 }
 0x156   :  { %v1109_v3 = vpop.f32.mrb[12].mxu0  ;;  %1159 = vmatmul.mubr.f32.gmra.mrb[10].mxu1 %v1106_v1 }
 0x157   :  { %v329_v4 = vpop.f32.mrb[13].mxu0  ;;  %1300 = vmatpush3.bf16.msra.mxu1 %v1275_v9 }
 0x158   :  { %v1110_v5 = vpop.f32.mrb[14].mxu0  ;;  %1161 = vmatprep.mubr.f32.mxu1 %v329_v4  ;;  %1293 = vmatprep.subr.bf16.mxu1 %v1279_v12 }
 0x159   :  { %v332_v6 = vpop.f32.mrb[15].mxu0 }
 0x15a   :  { %1162 = vmatmul.mubr.f32.gmra.mrb[12].mxu1 %v332_v6 }
 0x15b   :  { %1164 = vmatprep.mubr.f32.mxu1 %v1109_v3  ;;  %1301 = vmatpush3.bf16.msra.mxu1 %v1279_v12 }
 0x15c   :  { %1294 = vmatprep.subr.bf16.mxu1 %v1283_v15 }
 0x15e   :  { %1165 = vmatmul.mubr.f32.gmra.mrb[14].mxu1 %v1110_v5 }
 0x15f   :  { %1302 = vmatpush3.bf16.msra.mxu1 %v1283_v15 }
 0x215   :  { %v1145_v17 = vpop.f32.mrb[0].mxu1 }
 0x216   :  { %v490_v18 = vadd.f32 %v1145_v17, %v1559_v16  ;;  %v484_v19 = vpop.f32.mrb[1].mxu1 }
 0x217   :  { %v485_v21 = vadd.f32 %v1559_v16, %v484_v19 }
 0x218   :  { %v564_v22 = vmax.f32 %v490_v18, 0.0 }
 0x219   :  { %v563_v24 = vmax.f32 %v485_v21, 0.0  ;;  %v1148_v25 = vpop.f32.mrb[2].mxu1 }
 0x21a   :  { %v587_v26 = vmul.f32 %v1565_v20, %v564_v22  ;;  %v500_v27 = vadd.f32 %v1148_v25, %v1559_v16  ;;  %v494_v28 = vpop.f32.mrb[3].mxu1 }
 0x21b   :  { %v586_v29 = vmul.f32 %v1565_v20, %v563_v24  ;;  %v495_v30 = vadd.f32 %v1559_v16, %v494_v28 }
 0x21c   :  { %v610_v31 = vadd.f32 %v1571_v23, %v587_v26  ;;  %v566_v32 = vmax.f32 %v500_v27, 0.0 }
 0x21d   :  { %v565_v33 = vmax.f32 %v495_v30, 0.0  ;;  %v1151_v34 = vpop.f32.mrb[4].mxu1  ;;  %v609_v35 = vadd.f32 %v1571_v23, %v586_v29 }
 0x21e   :  { %v589_v36 = vmul.f32 %v1565_v20, %v566_v32  ;;  %v510_v37 = vadd.f32 %v1151_v34, %v1559_v16  ;;  %v504_v38 = vpop.f32.mrb[5].mxu1  ;;  %v626_v42 = vmax.f32 %v610_v31, 0.0 }
 0x21f   :  { %v588_v39 = vmul.f32 %v1565_v20, %v565_v33  ;;  %v505_v40 = vadd.f32 %v1559_v16, %v504_v38  ;;  %v625_v41 = vmax.f32 %v609_v35, 0.0 }
 0x220   :  { %v568_v43 = vmax.f32 %v510_v37, 0.0  ;;  %v612_v44 = vadd.f32 %v1571_v23, %v589_v36 }
 0x221   :  { %v567_v45 = vmax.f32 %v505_v40, 0.0  ;;  %v1154_v46 = vpop.f32.mrb[6].mxu1  ;;  %1199 = vmatprep.mubr.f32.mxu0 %v625_v41  ;;  %v611_v47 = vadd.f32 %v1571_v23, %v588_v39 }
 0x222   :  { %v591_v48 = vmul.f32 %v1565_v20, %v568_v43  ;;  %v520_v49 = vadd.f32 %v1154_v46, %v1559_v16  ;;  %v514_v50 = vpop.f32.mrb[7].mxu1  ;;  %1200 = vmatmul.mubr.f32.vlgmr.msra.gmra.mrb[16].mxu0 %v626_v42  ;;  %v628_v55 = vmax.f32 %v612_v44, 0.0 }
 0x223   :  { %v590_v51 = vmul.f32 %v1565_v20, %v567_v45  ;;  %v515_v52 = vadd.f32 %v1559_v16, %v514_v50  ;;  %v627_v53 = vmax.f32 %v611_v47, 0.0 }
 0x224   :  { %v570_v54 = vmax.f32 %v520_v49, 0.0  ;;  %v614_v56 = vadd.f32 %v1571_v23, %v591_v48 }
 0x225   :  { %v569_v57 = vmax.f32 %v515_v52, 0.0  ;;  %v1157_v58 = vpop.f32.mrb[8].mxu1  ;;  %1202 = vmatprep.mubr.f32.mxu0 %v627_v53  ;;  %v613_v59 = vadd.f32 %v1571_v23, %v590_v51 }
 0x226   :  { %v593_v60 = vmul.f32 %v1565_v20, %v570_v54  ;;  %v530_v61 = vadd.f32 %v1157_v58, %v1559_v16  ;;  %v524_v62 = vpop.f32.mrb[9].mxu1  ;;  %1203 = vmatmul.mubr.f32.gmra.mrb[18].mxu0 %v628_v55  ;;  %v630_v3 = vmax.f32 %v614_v56, 0.0 }
 0x227   :  { %v592_v63 = vmul.f32 %v1565_v20, %v569_v57  ;;  %v525_v0 = vadd.f32 %v1559_v16, %v524_v62  ;;  %v629_v1 = vmax.f32 %v613_v59, 0.0 }
 0x228   :  { %v572_v2 = vmax.f32 %v530_v61, 0.0  ;;  %v616_v4 = vadd.f32 %v1571_v23, %v593_v60 }
 0x229   :  { %v571_v5 = vmax.f32 %v525_v0, 0.0  ;;  %v1160_v6 = vpop.f32.mrb[10].mxu1  ;;  %1205 = vmatprep.mubr.f32.mxu0 %v629_v1  ;;  %v615_v7 = vadd.f32 %v1571_v23, %v592_v63 }
 0x22a   :  { %v595_v8 = vmul.f32 %v1565_v20, %v572_v2  ;;  %v540_v9 = vadd.f32 %v1160_v6, %v1559_v16  ;;  %v534_v10 = vpop.f32.mrb[11].mxu1  ;;  %1206 = vmatmul.mubr.f32.gmra.mrb[20].mxu0 %v630_v3  ;;  %v632_v17 = vmax.f32 %v616_v4, 0.0 }
 0x22b   :  { %v594_v11 = vmul.f32 %v1565_v20, %v571_v5  ;;  %v535_v12 = vadd.f32 %v1559_v16, %v534_v10  ;;  %v631_v13 = vmax.f32 %v615_v7, 0.0 }
 0x22c   :  { %v618_v14 = vadd.f32 %v1571_v23, %v595_v8  ;;  %v574_v15 = vmax.f32 %v540_v9, 0.0 }
 0x22d   :  { %v573_v18 = vmax.f32 %v535_v12, 0.0  ;;  %v1163_v19 = vpop.f32.mrb[12].mxu1  ;;  %1208 = vmatprep.mubr.f32.mxu0 %v631_v13  ;;  %v617_v21 = vadd.f32 %v1571_v23, %v594_v11 }
 0x22e   :  { %v597_v22 = vmul.f32 %v1565_v20, %v574_v15  ;;  %v550_v24 = vadd.f32 %v1163_v19, %v1559_v16  ;;  %v544_v25 = vpop.f32.mrb[13].mxu1  ;;  %1209 = vmatmul.mubr.f32.gmra.mrb[22].mxu0 %v632_v17  ;;  %v634_v29 = vmax.f32 %v618_v14, 0.0 }
 0x22f   :  { %v596_v26 = vmul.f32 %v1565_v20, %v573_v18  ;;  %v545_v27 = vadd.f32 %v1559_v16, %v544_v25  ;;  %v633_v28 = vmax.f32 %v617_v21, 0.0 }
 0x230   :  { %v576_v30 = vmax.f32 %v550_v24, 0.0  ;;  %v620_v31 = vadd.f32 %v1571_v23, %v597_v22 }
 0x231   :  { %v575_v32 = vmax.f32 %v545_v27, 0.0  ;;  %v1166_v33 = vpop.f32.mrb[14].mxu1  ;;  %1211 = vmatprep.mubr.f32.mxu1 %v633_v28  ;;  %v619_v34 = vadd.f32 %v1571_v23, %v596_v26 }
 0x232   :  { %v599_v35 = vmul.f32 %v1565_v20, %v576_v30  ;;  %v560_v36 = vadd.f32 %v1166_v33, %v1559_v16  ;;  %v554_v37 = vpop.f32.mrb[15].mxu1  ;;  %1212 = vmatmul.mubr.f32.vlgmr.msra.gmra.mrb[16].mxu1 %v634_v29  ;;  %v636_v42 = vmax.f32 %v620_v31, 0.0 }
 0x233   :  { %v598_v38 = vmul.f32 %v1565_v20, %v575_v32  ;;  %v555_v39 = vadd.f32 %v1559_v16, %v554_v37  ;;  %v635_v40 = vmax.f32 %v619_v34, 0.0 }
 0x234   :  { %v578_v41 = vmax.f32 %v560_v36, 0.0  ;;  %v622_v43 = vadd.f32 %v1571_v23, %v599_v35 }
 0x235   :  { %v577_v44 = vmax.f32 %v555_v39, 0.0  ;;  %1214 = vmatprep.mubr.f32.mxu1 %v635_v40  ;;  %v621_v45 = vadd.f32 %v1571_v23, %v598_v38 }
 0x236   :  { %v601_v46 = vmul.f32 %v1565_v20, %v578_v41  ;;  %1215 = vmatmul.mubr.f32.gmra.mrb[18].mxu1 %v636_v42  ;;  %v638_v49 = vmax.f32 %v622_v43, 0.0 }
 0x237   :  { %v600_v47 = vmul.f32 %v1565_v20, %v577_v44  ;;  %v637_v48 = vmax.f32 %v621_v45, 0.0 }
 0x238   :  { %v624_v50 = vadd.f32 %v1571_v23, %v601_v46 }
 0x239   :  { %1217 = vmatprep.mubr.f32.mxu1 %v637_v48  ;;  %v623_v16 = vadd.f32 %v1571_v23, %v600_v47 }
 0x23a   :  { %1218 = vmatmul.mubr.f32.gmra.mrb[20].mxu1 %v638_v49  ;;  %v640_v52 = vmax.f32 %v624_v50, 0.0 }
 0x23b   :  { %v639_v51 = vmax.f32 %v623_v16, 0.0 }
 0x23d   :  { %1220 = vmatprep.mubr.f32.mxu1 %v639_v51 }
 0x23e   :  { %1221 = vmatmul.mubr.f32.gmra.mrb[22].mxu1 %v640_v52 }
 0x2f5   :  { %v1201_v53 = vpop.f32.mrb[16].mxu0 }
 0x2f6   :  { %v723_v54 = vpop.f32.mrb[17].mxu0 }
 0x2f7   :  { %v955_v55 = vpack.c.bf16 %v1201_v53, %v723_v54 }
 0x2f9   :  { %956 = vst [vmem:[#allocation11] sm:$0xff] %v955_v55   ;;  %v1204_v56 = vpop.f32.mrb[18].mxu0 }
 0x2fa   :  { %v733_v57 = vpop.f32.mrb[19].mxu0 }
 0x2fb   :  { %v960_v58 = vpack.c.bf16 %v1204_v56, %v733_v57 }
 0x2fd   :  { %992 = vst [vmem:[#allocation11 + $0x8] sm:$0xff] %v960_v58   ;;  %v1207_v20 = vpop.f32.mrb[20].mxu0 }
 0x2fe   :  { %v743_v59 = vpop.f32.mrb[21].mxu0 }
 0x2ff   :  { %v965_v60 = vpack.c.bf16 %v1207_v20, %v743_v59 }
 0x301   :  { %993 = vst [vmem:[#allocation11 + $0x10] sm:$0xff] %v965_v60   ;;  %v1210_v61 = vpop.f32.mrb[22].mxu0 }
 0x302   :  { %v753_v62 = vpop.f32.mrb[23].mxu0 }
 0x303   :  { %v970_v23 = vpack.c.bf16 %v1210_v61, %v753_v62 }
 0x305   :  { %994 = vst [vmem:[#allocation11 + $0x18] sm:$0xff] %v970_v23   ;;  %v1213_v63 = vpop.f32.mrb[16].mxu1 }
 0x306   :  { %v763_v0 = vpop.f32.mrb[17].mxu1 }
 0x307   :  { %v975_v1 = vpack.c.bf16 %v1213_v63, %v763_v0 }
 0x309   :  { %995 = vst [vmem:[#allocation11 + $0x20] sm:$0xff] %v975_v1   ;;  %v1216_v2 = vpop.f32.mrb[18].mxu1 }
 0x30a   :  { %v773_v3 = vpop.f32.mrb[19].mxu1 }
 0x30b   :  { %v980_v4 = vpack.c.bf16 %v1216_v2, %v773_v3 }
 0x30d   :  { %996 = vst [vmem:[#allocation11 + $0x28] sm:$0xff] %v980_v4   ;;  %v1219_v5 = vpop.f32.mrb[20].mxu1 }
 0x30e   :  { %v783_v6 = vpop.f32.mrb[21].mxu1 }
 0x30f   :  { %v985_v7 = vpack.c.bf16 %v1219_v5, %v783_v6 }
 0x311   :  { %997 = vst [vmem:[#allocation11 + $0x30] sm:$0xff] %v985_v7   ;;  %v1222_v8 = vpop.f32.mrb[22].mxu1 }
 0x312   :  { %v793_v9 = vpop.f32.mrb[23].mxu1 }
 0x313   :  { %v990_v10 = vpack.c.bf16 %v1222_v8, %v793_v9 }
 0x315   :  { %998 = vst [vmem:[#allocation11 + $0x38] sm:$0xff] %v990_v10  }
 0x316   :  { %1427 = shalt.err (!%p1424_p8)
}
 0x317   :  { %s1428_s15 = scalar_lea.hbm %s1641_s7, 1024 }
 0x318   :  { %p1429_p9 = scmp.ne.s32.totalorder %s1641_s7, %s1428_s15  ;;  %p1432_p10 = scmp.lt.u32.totalorder %s1428_s15, %s1641_s7 }
 0x31a   :  { %p1434_p11 = pnand %p1432_p10, %p1429_p9 }
 0x31c   :  { %1437 = shalt.err (!%p1434_p11)
}
 0x31d   :  { %893 = dma.vmem_to_hbm [thread:$0]  %s888_s4, 1024, %s1641_s7, [#allocation5], %s1448_s13, %s1448_s13, %s1449_s14  }
 0x31e   :  { %1444 = dma.done.wait [#allocation5], 1024  }
 0x31f   :  { %1445 = vsyncadd [#allocation5], 4294966272 }
 0x320   :  { %897 = vsyncpa [#allocation4], 1 }
 0x321   :  { %898 = vsyncpa [#allocation7], 1 }
 0x322   :  { %899 = vsyncpa [#allocation10], 1 }
 0x323   :  { %900 = vsyncpa [#allocation5], 1 }

</bundles_post_ra>
